<compile_context>
chip_gen: v7x
topology: tpu7x:2x2x1
jax: 0.10.0
libtpu: 0.0.40
codegen_flags: <defaults>
</compile_context>

<pallas_src>
import numpy as np
import jax
import jax.numpy as jnp
from jax.experimental import pallas as pl
from jax.experimental.pallas import tpu as pltpu

LANES = 128                       # lane-dense kernel outputs (unmasked vst)
VMEM_LIMIT = 32 * 1024 * 1024     # explicit, safe on v5e/v6e (128 MiB) and v7x (64 MiB)


def _round_up(x, m):
    return ((x + m - 1) // m) * m


# ----------------------------------------------------------------------------
# Kernel A: fused cnn_proj + lstm_proj + n_feature_proj (+ l1 sentence half)
# ----------------------------------------------------------------------------
def _sent_proj_kernel(x_ref, w_ref, b_ref, o_ref):
    o_ref[...] = (jnp.dot(x_ref[...], w_ref[...], preferred_element_type=jnp.float32)
                  + b_ref[...])


def sent_proj_pallas(x_bf16, w_bf16, b_f32, tm):
    M, Kc = x_bf16.shape
    return pl.pallas_call(
        _sent_proj_kernel,
        grid=(M // tm,),
        out_shape=jax.ShapeDtypeStruct((M, LANES), jnp.float32),
        in_specs=[
            pl.BlockSpec((tm, Kc), lambda i: (i, 0)),
            pl.BlockSpec((Kc, LANES), lambda i: (0, 0)),
            pl.BlockSpec((1, LANES), lambda i: (0, 0)),
        ],
        out_specs=pl.BlockSpec((tm, LANES), lambda i: (i, 0)),
        compiler_params=pltpu.CompilerParams(
            dimension_semantics=("parallel",),
            vmem_limit_bytes=VMEM_LIMIT),
    )(x_bf16, w_bf16, b_f32)


# ----------------------------------------------------------------------------
# Kernel B: lstm_pass_proj + compute_doc (masked softmax) + wh(relu(l1([sent, doc])))
#   All linear maps feeding the doc path are pre-folded on the host:
#     Wpz  = [ wp@wd | wp@wd@w1d | 0 ]                (bf16, [2H, 128])
#     vecs = row0: [ bp@wd+bd | (bp@wd+bd)@w1d | 1 | 0 ]   (bias; lane 2H carries a "1")
#            row1: [ wa       | 0              | ba| 0 ]   (doc_att weight; lane 2H carries ba)
#            row2: [ wh_b , 0 ... ]
#     W2   = rows [H:2H) hold wh_w in cols [0:2), everything else 0 -> garbage lanes contribute 0.
# ----------------------------------------------------------------------------
def doc_head_pallas(pass2d, mask3, sent2d, wpz, w2, vecs, *, db, pmax, smax):
    MP, K2 = pass2d.shape
    MS = sent2d.shape[0]
    n_blocks = MS // (db * smax)

    def kernel(pass_ref, mask_ref, sent_ref, wpz_ref, w2_ref, vec_ref, o_ref):
        b_pz = vec_ref[0:1, :]                                  # [1, 128]
        wa = vec_ref[1:2, :]                                    # [1, 128]
        b2 = vec_ref[2:3, :]                                    # [1, 128]

        # passage projection chain (lstm_pass_proj -> doc_layer, and its @w1d image)
        zf = (jnp.dot(pass_ref[...], wpz_ref[...], preferred_element_type=jnp.float32)
              .reshape(db, pmax, LANES) + b_pz)                 # [Db, Pmax, 128]

        # attention score = z @ wa + ba (ba rides on lane 2H via the constant-1 lane in b_pz)
        score = jnp.sum(zf * wa, axis=-1, keepdims=True)        # [Db, Pmax, 1]
        score = jnp.where(score >= 0.0, score, 0.01 * score)    # leaky_relu
        mask = mask_ref[...]                                    # [Db, Pmax, 1] (1 valid / 0 pad)
        score = jnp.where(mask > 0.5, score, -1e30)
        score = score - jnp.max(score, axis=1, keepdims=True)
        e = jnp.exp(score) * mask
        denom = jnp.maximum(jnp.sum(e, axis=1, keepdims=True), 1e-20)
        att = e * pl.reciprocal(denom, approx=True)
        # docf lanes [0:H) = doc, lanes [H:2H) = doc @ w1d  (exact by linearity)
        docf = jnp.sum(att * zf, axis=1, keepdims=True)         # [Db, 1, 128]

        # head: relu(sent_state@W1s + b1 + doc@W1d) @ wh  (sent half came in from Kernel A)
        h = jnp.maximum(sent_ref[...].reshape(db, smax, LANES) + docf, 0.0)
        o_ref[...] = (jnp.dot(h.reshape(db * smax, LANES), w2_ref[...],
                              preferred_element_type=jnp.float32) + b2)

    return pl.pallas_call(
        kernel,
        grid=(n_blocks,),
        out_shape=jax.ShapeDtypeStruct((MS, LANES), jnp.float32),
        in_specs=[
            pl.BlockSpec((db * pmax, K2), lambda i: (i, 0)),        # passage features (bf16)
            pl.BlockSpec((db, pmax, 1), lambda i: (i, 0, 0)),       # passage validity mask
            pl.BlockSpec((db * smax, LANES), lambda i: (i, 0)),     # Kernel A output (f32)
            pl.BlockSpec((K2, LANES), lambda i: (0, 0)),            # folded passage->doc weight
            pl.BlockSpec((LANES, LANES), lambda i: (0, 0)),         # padded wh weight
            pl.BlockSpec((8, LANES), lambda i: (0, 0)),             # packed bias/att vectors
        ],
        out_specs=pl.BlockSpec((db * smax, LANES), lambda i: (i, 0)),
        compiler_params=pltpu.CompilerParams(
            dimension_semantics=("parallel",),
            vmem_limit_bytes=VMEM_LIMIT),
    )(pass2d, mask3, sent2d, wpz, w2, vecs)


# ----------------------------------------------------------------------------
# Plain-JAX glue: sinusoid table, LSTMs (PyTorch gate order i,f,g,o)
# ----------------------------------------------------------------------------
def get_sinusoid_encoding_table(n_position, d_hid, padding_idx=None):
    pos = np.arange(n_position, dtype=np.float64)[:, None]
    hid = np.arange(d_hid, dtype=np.float64)[None, :]
    angle = pos / np.power(10000.0, 2.0 * (hid // 2) / d_hid)
    table = np.zeros((n_position, d_hid), dtype=np.float32)
    table[:, 0::2] = np.sin(angle[:, 0::2])
    table[:, 1::2] = np.cos(angle[:, 1::2])
    if padding_idx is not None:
        table[padding_idx] = 0.0
    return jnp.asarray(table)


def _lstm_cell_steps(xp, whh):
    def step(carry, xp_t):
        h, c = carry
        gates = xp_t + h @ whh.T
        i, f, g, o = jnp.split(gates, 4, axis=-1)
        c = jax.nn.sigmoid(f) * c + jax.nn.sigmoid(i) * jnp.tanh(g)
        h = jax.nn.sigmoid(o) * jnp.tanh(c)
        return (h, c), h
    return step


def _lstm_scan_all(x, wih, whh, bih, bhh):
    """LSTM over [T, in] -> all hidden states [T, hid] (input projection hoisted)."""
    hid = whh.shape[1]
    xp = x @ wih.T + (bih + bhh)
    init = (jnp.zeros((hid,), jnp.float32), jnp.zeros((hid,), jnp.float32))
    _, hs = jax.lax.scan(_lstm_cell_steps(xp, whh), init, xp)
    return hs


def _lstm_final(x, wih, whh, bih, bhh):
    """LSTM over [T, in] -> final hidden state [hid] only."""
    hid = whh.shape[1]
    xp = x @ wih.T + (bih + bhh)
    init = (jnp.zeros((hid,), jnp.float32), jnp.zeros((hid,), jnp.float32))
    (h, _), _ = jax.lax.scan(_lstm_cell_steps(xp, whh), init, xp)
    return h


def bilstm_packed(x, length, p):
    """Length-aware bi-LSTM on a zero-padded [T, D] sequence; valid rows match
    pack_padded_sequence semantics (rows >= length are garbage, discarded by caller)."""
    T = x.shape[0]
    hf = _lstm_scan_all(x, p["wih_f"], p["whh_f"], p["bih_f"], p["bhh_f"])
    rev = jnp.clip(length - 1 - jnp.arange(T), 0, T - 1)
    hb_rev = _lstm_scan_all(x[rev], p["wih_b"], p["whh_b"], p["bih_b"], p["bhh_b"])
    hb = hb_rev[rev]
    return jnp.concatenate([hf, hb], axis=-1)


def bilstm_last(x, p):
    """output[-1] of an UNPACKED bidirectional LSTM (matches output[:, -1, :] of nn.LSTM on
    the zero-padded tensor).  Backward hidden at the last step is one cell step on x[-1]."""
    hf_last = _lstm_final(x, p["wih_f"], p["whh_f"], p["bih_f"], p["bhh_f"])
    hb_last = _lstm_final(x[-1:], p["wih_b"], p["whh_b"], p["bih_b"], p["bhh_b"])
    return jnp.concatenate([hf_last, hb_last], axis=-1)


# ----------------------------------------------------------------------------
# Parameter init (deterministic, synthetic)
# ----------------------------------------------------------------------------
def _lin(key, fan_in, fan_out, bias=True, scale=0.1):
    kw, kb = jax.random.split(key)
    w_t = jax.random.normal(kw, (fan_in, fan_out), jnp.float32) * scale     # [in, out]
    b = jax.random.normal(kb, (fan_out,), jnp.float32) * scale if bias else None
    return w_t, b


def _lstm_params(key, in_dim, hid, scale=0.1):
    ks = jax.random.split(key, 8)
    m = lambda k, s: jax.random.normal(k, s, jnp.float32) * scale
    return dict(
        wih_f=m(ks[0], (4 * hid, in_dim)), whh_f=m(ks[1], (4 * hid, hid)),
        bih_f=m(ks[2], (4 * hid,)), bhh_f=m(ks[3], (4 * hid,)),
        wih_b=m(ks[4], (4 * hid, in_dim)), whh_b=m(ks[5], (4 * hid, hid)),
        bih_b=m(ks[6], (4 * hid,)), bhh_b=m(ks[7], (4 * hid,)),
    )


def init_params(key, hps, vocab_size):
    ks = jax.random.split(key, 16)
    D, H, nF = hps["word_emb_dim"], hps["hidden_size"], hps["n_feature_size"]
    p = {}
    p["embed"] = jax.random.normal(ks[0], (vocab_size, D), jnp.float32) * 0.1
    p["tf_embed"] = jax.random.normal(ks[1], (10, hps["feat_embed_size"]), jnp.float32) * 0.1
    p["sent_pos_embed"] = get_sinusoid_encoding_table(
        hps["doc_max_timesteps"] + 1, D, padding_idx=0)
    p["cnn_proj_w"], p["cnn_proj_b"] = _lin(ks[2], D, nF)
    p["lstm_word"] = _lstm_params(ks[3], D, hps["lstm_hidden_state"])
    p["lstm_proj_w"], p["lstm_proj_b"] = _lin(ks[4], 2 * hps["lstm_hidden_state"], nF)
    p["n_feature_proj_w"], _ = _lin(ks[5], 2 * nF, H, bias=False)
    p["lstm_passage"] = _lstm_params(ks[6], H, H)
    p["lstm_pass_proj_w"], p["lstm_pass_proj_b"] = _lin(ks[7], 2 * H, H)
    p["doc_layer_w"], p["doc_layer_b"] = _lin(ks[8], H, H)
    p["doc_att_w"], p["doc_att_b"] = _lin(ks[9], H, 1)
    p["l1_w"], p["l1_b"] = _lin(ks[10], 2 * H, H)
    p["wh_w"], p["wh_b"] = _lin(ks[11], H, 2)
    return p


# ----------------------------------------------------------------------------
# Forward builder: graph structure (static python lists) is baked into a jitted fn
# ----------------------------------------------------------------------------
def build_forward(hps, structure):
    spd = list(structure["sents_per_doc"])
    spp = list(structure["sents_per_passage"])
    ppd = list(structure["passages_per_doc"])
    Nd, Np, Ns = len(spd), len(spp), sum(spd)
    H, nF = hps["hidden_size"], hps["n_feature_size"]
    lh, D = hps["lstm_hidden_state"], hps["word_emb_dim"]
    sent_scale = 2.0 ** hps["n_iter"]   # TODO(synk): GAT layers not provided; identity => doubling per iter

    Smax_pad = _round_up(max(spd), 8)
    Pmax_pad = _round_up(max(ppd), 8)
    max_sent = max(spp)                 # EXACT (not rounded): preserves padded-LSTM output[:, -1, :] semantics
    Db = Nd if Nd <= 8 else 8
    Nd_pad = _round_up(Nd, Db)
    M = Nd_pad * Smax_pad
    tm = M if M <= 256 else 256
    M_pad = _round_up(M, tm)

    # ---- static index / mask tables (numpy -> constants in the jitted program) ----
    pad_idx = np.zeros((M,), np.int32)
    pad_msk = np.zeros((M, 1), np.float32)
    valid_rows = np.zeros((Ns,), np.int32)
    s = 0
    for d, n in enumerate(spd):
        rows = d * Smax_pad + np.arange(n)
        pad_idx[rows] = np.arange(s, s + n)
        pad_msk[rows] = 1.0
        valid_rows[s:s + n] = rows
        s += n
    ps_idx = np.zeros((Np, max_sent), np.int32)
    ps_msk = np.zeros((Np, max_sent, 1), np.float32)
    p = 0
    for d, npass in enumerate(ppd):
        pos = 0
        for _ in range(npass):
            n = spp[p]
            ps_idx[p, :n] = d * Smax_pad + pos + np.arange(n)
            ps_msk[p, :n] = 1.0
            pos += n
            p += 1
    pp_idx = np.zeros((Nd_pad, Pmax_pad), np.int32)
    pp_msk = np.zeros((Nd_pad, Pmax_pad, 1), np.float32)
    p = 0
    for d, npass in enumerate(ppd):
        pp_idx[d, :npass] = np.arange(p, p + npass)
        pp_msk[d, :npass] = 1.0
        p += npass
    doc_lens = np.array(spd + [0] * (Nd_pad - Nd), np.int32)

    def forward(params, wid, tffrac, sent_word_ids, sent_position):
        embed = params["embed"]
        _word_feature = embed[wid]                       # word-node states (unchanged by identity GATs)
        _tfidf = params["tf_embed"][tffrac]              # TODO(synk): GAT edge feature; GAT layers not provided

        # ---- set_snfeature ----
        # TODO(synk): sentEncoder (ngram CNN) not provided; mean-pooled word embeddings substitute.
        ngram = embed[sent_word_ids].mean(axis=1)                              # [Ns, D]
        x_cnn = ngram + params["sent_pos_embed"][sent_position]                # [Ns, D]
        x_cnn_pad = (x_cnn[jnp.asarray(pad_idx)] * jnp.asarray(pad_msk)
                     ).reshape(Nd_pad, Smax_pad, D)

        # word-level bi-LSTM (exact pack_padded_sequence semantics for valid rows)
        lstm_out = jax.vmap(bilstm_packed, in_axes=(0, 0, None))(
            x_cnn_pad, jnp.asarray(doc_lens), params["lstm_word"])             # [Nd_pad, Smax_pad, 2*lh]

        # ---- Kernel A: fold n_feature_proj into cnn/lstm proj, and l1's sent half into extra lanes ----
        w_nf = params["n_feature_proj_w"]
        w_cat = jnp.concatenate([params["cnn_proj_w"] @ w_nf[:nF],
                                 params["lstm_proj_w"] @ w_nf[nF:]], axis=0)   # [D+2lh, H]
        b_cat = params["cnn_proj_b"] @ w_nf[:nF] + params["lstm_proj_b"] @ w_nf[nF:]
        w1s = params["l1_w"][:H] * sent_scale
        Wbig = jnp.zeros((D + 2 * lh, LANES), jnp.float32)
        Wbig = Wbig.at[:, :H].set(w_cat).at[:, H:2 * H].set(w_cat @ w1s)
        bbig = jnp.zeros((1, LANES), jnp.float32)
        bbig = bbig.at[0, :H].set(b_cat).at[0, H:2 * H].set(b_cat @ w1s + params["l1_b"])

        x_cat = jnp.concatenate([x_cnn_pad, lstm_out], axis=-1).reshape(M, D + 2 * lh)
        x_cat = x_cat.astype(jnp.bfloat16)
        if M_pad != M:
            x_cat = jnp.pad(x_cat, ((0, M_pad - M), (0, 0)))
        sent128 = sent_proj_pallas(x_cat, Wbig.astype(jnp.bfloat16), bbig, tm)[:M]
        # lanes [0:H) = sent_feature, lanes [H:2H) = sent_state @ W1_sent + b1

        # ---- passage features (create_sent_passage_tensor + compute_passage_feature) ----
        sent_feat_rows = sent128[:, :H]                                        # [M, H]
        sent_passage = sent_feat_rows[jnp.asarray(ps_idx)] * jnp.asarray(ps_msk)   # [Np, max_sent, H]
        passage_feature = jax.vmap(bilstm_last, in_axes=(0, None))(
            sent_passage, params["lstm_passage"])                              # [Np, 2H]

        # ---- Kernel B operand folding (lstm_pass_proj -> doc_layer -> {att, @w1d}) ----
        wp, bp = params["lstm_pass_proj_w"], params["lstm_pass_proj_b"]
        wd, bd = params["doc_layer_w"], params["doc_layer_b"]
        wa, ba = params["doc_att_w"][:, 0], params["doc_att_b"][0]
        w1d = params["l1_w"][H:]
        Wz = wp @ wd                                  # pf @ Wz + cz == doc_layer(lstm_pass_proj(pf))
        cz = bp @ wd + bd
        Wpz = jnp.zeros((2 * H, LANES), jnp.float32)
        Wpz = Wpz.at[:, :H].set(Wz).at[:, H:2 * H].set(Wz @ w1d)
        vecs = jnp.zeros((8, LANES), jnp.float32)
        vecs = vecs.at[0, :H].set(cz).at[0, H:2 * H].set(cz @ w1d).at[0, 2 * H].set(1.0)
        vecs = vecs.at[1, :H].set(wa).at[1, 2 * H].set(ba)
        vecs = vecs.at[2, :2].set(params["wh_b"])
        W2 = jnp.zeros((LANES, LANES), jnp.float32).at[H:2 * H, :2].set(params["wh_w"])

        pass2d = passage_feature[jnp.asarray(pp_idx.reshape(-1))].astype(jnp.bfloat16)  # [Nd_pad*Pmax_pad, 2H]

        if hps["use_doc"]:
            out2d = doc_head_pallas(pass2d, jnp.asarray(pp_msk), sent128,
                                    Wpz.astype(jnp.bfloat16), W2, vecs,
                                    db=Db, pmax=Pmax_pad, smax=Smax_pad)       # [M, 128]
            result = out2d[jnp.asarray(valid_rows), :2]                        # [Ns, 2]
        else:
            result = ((sent_feat_rows[jnp.asarray(valid_rows)] * sent_scale)
                      @ params["wh_w"] + params["wh_b"])
        return result

    return jax.jit(forward)


# ----------------------------------------------------------------------------
# Main: synthetic graph batch (2 documents), deterministic inputs
# ----------------------------------------------------------------------------
if __name__ == "__main__":
    hps = dict(
        word_emb_dim=32, hidden_size=32, n_feature_size=16, feat_embed_size=8,
        n_head=4, n_iter=1, lstm_hidden_state=16, lstm_layers=1,
        bidirectional=True, doc_max_timesteps=16, use_doc=True,
        atten_dropout_prob=0.1, ffn_inner_hidden_size=64, ffn_dropout_prob=0.1,
    )
    VOCAB = 50
    WORDS_PER_SENT = 5

    key = jax.random.PRNGKey(0)
    k_params, k_wid, k_tf, k_sw = jax.random.split(key, 4)
    params = init_params(k_params, hps, VOCAB)

    # Synthetic batched graph structure:
    #   doc 0: 3 passages with [2, 3, 2] sentences  -> 7 sentences
    #   doc 1: 2 passages with [3, 2] sentences     -> 5 sentences
    structure = dict(
        sents_per_passage=[2, 3, 2, 3, 2],
        passages_per_doc=[3, 2],
        sents_per_doc=[7, 5],
    )
    n_sent = sum(structure["sents_per_doc"])
    n_word_nodes = 20
    n_edges = 24

    wid = jax.random.randint(k_wid, (n_word_nodes,), 0, VOCAB)
    tffrac = jax.random.randint(k_tf, (n_edges,), 0, 10)
    sent_word_ids = jax.random.randint(k_sw, (n_sent, WORDS_PER_SENT), 0, VOCAB)
    sent_position = jnp.asarray(
        [min(i + 1, hps["doc_max_timesteps"])
         for d in structure["sents_per_doc"] for i in range(d)], dtype=jnp.int32)

    fwd = build_forward(hps, structure)
    result = fwd(params, wid, tffrac, sent_word_ids, sent_position)   # [sentnum, 2]
    jax.block_until_ready(result)
    assert result.shape == (n_sent, 2) and result.dtype == jnp.float32
    assert bool(jnp.all(jnp.isfinite(result)))
    print("KERNEL_OK")
</pallas_src>

<mosaic_0001>
module attributes {stable_mosaic.version = 11 : i64} {
  func.func @_sent_proj_kernel(%arg0: i32, %arg1: memref<16x64xbf16, #tpu.memory_space<vmem>>, %arg2: memref<64x128xbf16, #tpu.memory_space<vmem>>, %arg3: memref<1x128xf32, #tpu.memory_space<vmem>>, %arg4: memref<16x128xf32, #tpu.memory_space<vmem>>) attributes {dimension_semantics = [#tpu.dimension_semantics<parallel>], iteration_bounds = array<i64: 1>, scalar_prefetch = 0 : i64, scratch_operands = 0 : i64, tpu.core_type = #tpu.core_type<tc>, window_params = [{transform_indices = @transform_0, window_bounds = array<i64: 16, 64>}, {pipeline_mode = #tpu.pipeline_mode<synchronous>, transform_indices = @transform_1, window_bounds = array<i64: 64, 128>}, {pipeline_mode = #tpu.pipeline_mode<synchronous>, transform_indices = @transform_2, window_bounds = array<i64: 1, 128>}, {transform_indices = @transform_3, window_bounds = array<i64: 16, 128>}]} {
    %c0 = arith.constant 0 : index
    %c0_0 = arith.constant 0 : index
    %0 = vector.load %arg1[%c0, %c0_0] : memref<16x64xbf16, #tpu.memory_space<vmem>>, vector<16x64xbf16>
    %c0_1 = arith.constant 0 : index
    %c0_2 = arith.constant 0 : index
    %1 = vector.load %arg2[%c0_1, %c0_2] : memref<64x128xbf16, #tpu.memory_space<vmem>>, vector<64x128xbf16>
    %cst = arith.constant dense<0.000000e+00> : vector<16x128xf32>
    %2 = tpu.matmul %0, %1, %cst {dimension_numbers = #tpu.dot_dimension_numbers<[1], [0], [0], [1], [0, 0, 1, 1], [], []>} : vector<16x64xbf16>, vector<64x128xbf16>, vector<16x128xf32> -> vector<16x128xf32>
    %c0_3 = arith.constant 0 : index
    %c0_4 = arith.constant 0 : index
    %3 = vector.load %arg3[%c0_3, %c0_4] : memref<1x128xf32, #tpu.memory_space<vmem>>, vector<1x128xf32>
    %4 = vector.broadcast %3 : vector<1x128xf32> to vector<16x128xf32>
    %5 = arith.addf %2, %4 : vector<16x128xf32>
    %c0_5 = arith.constant 0 : index
    %c0_6 = arith.constant 0 : index
    %6 = vector.load %arg4[%c0_5, %c0_6] : memref<16x128xf32, #tpu.memory_space<vmem>>, vector<16x128xf32>
    tpu.vector_store %arg4[%c0_5, %c0_6], %5 {strides = array<i32>} : memref<16x128xf32, #tpu.memory_space<vmem>>, vector<16x128xf32>,
    return
  }
  func.func @transform_0(%arg0: i32) -> (i32, i32) {
    %c0_i32 = arith.constant 0 : i32
    %c0_i32_0 = arith.constant 0 : i32
    return %arg0, %c0_i32 : i32, i32
  }
  func.func @transform_1(%arg0: i32) -> (i32, i32) {
    %c0_i32 = arith.constant 0 : i32
    %c0_i32_0 = arith.constant 0 : i32
    %c0_i32_1 = arith.constant 0 : i32
    return %c0_i32, %c0_i32_0 : i32, i32
  }
  func.func @transform_2(%arg0: i32) -> (i32, i32) {
    %c0_i32 = arith.constant 0 : i32
    %c0_i32_0 = arith.constant 0 : i32
    %c0_i32_1 = arith.constant 0 : i32
    return %c0_i32, %c0_i32_0 : i32, i32
  }
  func.func @transform_3(%arg0: i32) -> (i32, i32) {
    %c0_i32 = arith.constant 0 : i32
    %c0_i32_0 = arith.constant 0 : i32
    return %arg0, %c0_i32 : i32, i32
  }
}

module attributes {stable_mosaic.version = 11 : i64} {
  func.func @kernel(%arg0: i32, %arg1: memref<16x64xbf16, #tpu.memory_space<vmem>>, %arg2: memref<2x8x1xf32, #tpu.memory_space<vmem>>, %arg3: memref<16x128xf32, #tpu.memory_space<vmem>>, %arg4: memref<64x128xbf16, #tpu.memory_space<vmem>>, %arg5: memref<128x128xf32, #tpu.memory_space<vmem>>, %arg6: memref<8x128xf32, #tpu.memory_space<vmem>>, %arg7: memref<16x128xf32, #tpu.memory_space<vmem>>) attributes {dimension_semantics = [#tpu.dimension_semantics<parallel>], iteration_bounds = array<i64: 1>, scalar_prefetch = 0 : i64, scratch_operands = 0 : i64, tpu.core_type = #tpu.core_type<tc>, window_params = [{transform_indices = @transform_0, window_bounds = array<i64: 16, 64>}, {transform_indices = @transform_1, window_bounds = array<i64: 2, 8, 1>}, {transform_indices = @transform_2, window_bounds = array<i64: 16, 128>}, {pipeline_mode = #tpu.pipeline_mode<synchronous>, transform_indices = @transform_3, window_bounds = array<i64: 64, 128>}, {pipeline_mode = #tpu.pipeline_mode<synchronous>, transform_indices = @transform_4, window_bounds = array<i64: 128, 128>}, {pipeline_mode = #tpu.pipeline_mode<synchronous>, transform_indices = @transform_5, window_bounds = array<i64: 8, 128>}, {transform_indices = @transform_6, window_bounds = array<i64: 16, 128>}]} {
    %c0 = arith.constant 0 : index
    %c0_0 = arith.constant 0 : index
    %0 = vector.load %arg6[%c0, %c0_0] : memref<8x128xf32, #tpu.memory_space<vmem>>, vector<1x128xf32>
    %c1 = arith.constant 1 : index
    %c0_1 = arith.constant 0 : index
    %1 = vector.load %arg6[%c1, %c0_1] : memref<8x128xf32, #tpu.memory_space<vmem>>, vector<1x128xf32>
    %c2 = arith.constant 2 : index
    %c0_2 = arith.constant 0 : index
    %2 = vector.load %arg6[%c2, %c0_2] : memref<8x128xf32, #tpu.memory_space<vmem>>, vector<1x128xf32>
    %c0_3 = arith.constant 0 : index
    %c0_4 = arith.constant 0 : index
    %3 = vector.load %arg1[%c0_3, %c0_4] : memref<16x64xbf16, #tpu.memory_space<vmem>>, vector<16x64xbf16>
    %c0_5 = arith.constant 0 : index
    %c0_6 = arith.constant 0 : index
    %4 = vector.load %arg4[%c0_5, %c0_6] : memref<64x128xbf16, #tpu.memory_space<vmem>>, vector<64x128xbf16>
    %cst = arith.constant dense<0.000000e+00> : vector<16x128xf32>
    %5 = tpu.matmul %3, %4, %cst {dimension_numbers = #tpu.dot_dimension_numbers<[1], [0], [0], [1], [0, 0, 1, 1], [], []>} : vector<16x64xbf16>, vector<64x128xbf16>, vector<16x128xf32> -> vector<16x128xf32>
    %6 = vector.shape_cast %5 : vector<16x128xf32> to vector<2x8x128xf32>
    %7 = vector.shape_cast %0 : vector<1x128xf32> to vector<1x1x128xf32>
    %8 = vector.broadcast %7 : vector<1x1x128xf32> to vector<2x8x128xf32>
    %9 = arith.addf %6, %8 : vector<2x8x128xf32>
    %10 = vector.shape_cast %1 : vector<1x128xf32> to vector<1x1x128xf32>
    %11 = vector.broadcast %10 : vector<1x1x128xf32> to vector<2x8x128xf32>
    %12 = arith.mulf %9, %11 : vector<2x8x128xf32>
    %cst_7 = arith.constant dense<0.000000e+00> : vector<2x8xf32>
    %13 = vector.multi_reduction <add>, %12, %cst_7 [2] : vector<2x8x128xf32> to vector<2x8xf32>
    %14 = vector.shape_cast %13 : vector<2x8xf32> to vector<2x8x1xf32>
    %cst_8 = arith.constant 0.000000e+00 : f32
    %15 = vector.broadcast %cst_8 : f32 to vector<2x8x1xf32>
    %16 = arith.cmpf oge, %14, %15 : vector<2x8x1xf32>
    %cst_9 = arith.constant 0.00999999977 : f32
    %17 = vector.broadcast %cst_9 : f32 to vector<2x8x1xf32>
    %18 = arith.mulf %17, %14 : vector<2x8x1xf32>
    %19 = arith.select %16, %14, %18 : vector<2x8x1xi1>, vector<2x8x1xf32>
    %c0_10 = arith.constant 0 : index
    %c0_11 = arith.constant 0 : index
    %c0_12 = arith.constant 0 : index
    %20 = vector.load %arg2[%c0_10, %c0_11, %c0_12] : memref<2x8x1xf32, #tpu.memory_space<vmem>>, vector<2x8x1xf32>
    %cst_13 = arith.constant 5.000000e-01 : f32
    %21 = vector.broadcast %cst_13 : f32 to vector<2x8x1xf32>
    %22 = arith.cmpf ogt, %20, %21 : vector<2x8x1xf32>
    %cst_14 = arith.constant -1.000000e+30 : f32
    %23 = vector.broadcast %cst_14 : f32 to vector<2x8x1xf32>
    %24 = arith.select %22, %19, %23 : vector<2x8x1xi1>, vector<2x8x1xf32>
    %cst_15 = arith.constant dense<0xFF800000> : vector<2x1xf32>
    %25 = vector.multi_reduction <maximumf>, %24, %cst_15 [1] : vector<2x8x1xf32> to vector<2x1xf32>
    %26 = vector.shape_cast %25 : vector<2x1xf32> to vector<2x1x1xf32>
    %27 = vector.broadcast %26 : vector<2x1x1xf32> to vector<2x8x1xf32>
    %28 = arith.subf %24, %27 : vector<2x8x1xf32>
    %29 = math.exp %28 : vector<2x8x1xf32>
    %30 = arith.mulf %29, %20 : vector<2x8x1xf32>
    %cst_16 = arith.constant dense<0.000000e+00> : vector<2x1xf32>
    %31 = vector.multi_reduction <add>, %30, %cst_16 [1] : vector<2x8x1xf32> to vector<2x1xf32>
    %32 = vector.shape_cast %31 : vector<2x1xf32> to vector<2x1x1xf32>
    %cst_17 = arith.constant 9.99999968E-21 : f32
    %33 = vector.broadcast %cst_17 : f32 to vector<2x1x1xf32>
    %34 = arith.maximumf %32, %33 : vector<2x1x1xf32>
    %35 = tpu.reciprocal %34 {approx = true} : vector<2x1x1xf32> -> vector<2x1x1xf32>
    %36 = vector.broadcast %35 : vector<2x1x1xf32> to vector<2x8x1xf32>
    %37 = arith.mulf %30, %36 : vector<2x8x1xf32>
    %38 = vector.broadcast %37 : vector<2x8x1xf32> to vector<2x8x128xf32>
    %39 = arith.mulf %38, %9 : vector<2x8x128xf32>
    %cst_18 = arith.constant dense<0.000000e+00> : vector<2x128xf32>
    %40 = vector.multi_reduction <add>, %39, %cst_18 [1] : vector<2x8x128xf32> to vector<2x128xf32>
    %41 = vector.shape_cast %40 : vector<2x128xf32> to vector<2x1x128xf32>
    %c0_19 = arith.constant 0 : index
    %c0_20 = arith.constant 0 : index
    %42 = vector.load %arg3[%c0_19, %c0_20] : memref<16x128xf32, #tpu.memory_space<vmem>>, vector<16x128xf32>
    %43 = vector.shape_cast %42 : vector<16x128xf32> to vector<2x8x128xf32>
    %44 = vector.broadcast %41 : vector<2x1x128xf32> to vector<2x8x128xf32>
    %45 = arith.addf %43, %44 : vector<2x8x128xf32>
    %cst_21 = arith.constant 0.000000e+00 : f32
    %46 = vector.broadcast %cst_21 : f32 to vector<2x8x128xf32>
    %47 = arith.maximumf %45, %46 : vector<2x8x128xf32>
    %48 = vector.shape_cast %47 : vector<2x8x128xf32> to vector<16x128xf32>
    %c0_22 = arith.constant 0 : index
    %c0_23 = arith.constant 0 : index
    %49 = vector.load %arg5[%c0_22, %c0_23] : memref<128x128xf32, #tpu.memory_space<vmem>>, vector<128x128xf32>
    %cst_24 = arith.constant dense<0.000000e+00> : vector<16x128xf32>
    %50 = tpu.matmul %48, %49, %cst_24 {dimension_numbers = #tpu.dot_dimension_numbers<[1], [0], [0], [1], [0, 0, 1, 1], [], []>} : vector<16x128xf32>, vector<128x128xf32>, vector<16x128xf32> -> vector<16x128xf32>
    %51 = vector.broadcast %2 : vector<1x128xf32> to vector<16x128xf32>
    %52 = arith.addf %50, %51 : vector<16x128xf32>
    %c0_25 = arith.constant 0 : index
    %c0_26 = arith.constant 0 : index
    %53 = vector.load %arg7[%c0_25, %c0_26] : memref<16x128xf32, #tpu.memory_space<vmem>>, vector<16x128xf32>
    tpu.vector_store %arg7[%c0_25, %c0_26], %52 {strides = array<i32>} : memref<16x128xf32, #tpu.memory_space<vmem>>, vector<16x128xf32>,
    return
  }
  func.func @transform_0(%arg0: i32) -> (i32, i32) {
    %c0_i32 = arith.constant 0 : i32
    %c0_i32_0 = arith.constant 0 : i32
    return %arg0, %c0_i32 : i32, i32
  }
  func.func @transform_1(%arg0: i32) -> (i32, i32, i32) {
    %c0_i32 = arith.constant 0 : i32
    %c0_i32_0 = arith.constant 0 : i32
    %c0_i32_1 = arith.constant 0 : i32
    return %arg0, %c0_i32, %c0_i32_0 : i32, i32, i32
  }
  func.func @transform_2(%arg0: i32) -> (i32, i32) {
    %c0_i32 = arith.constant 0 : i32
    %c0_i32_0 = arith.constant 0 : i32
    return %arg0, %c0_i32 : i32, i32
  }
  func.func @transform_3(%arg0: i32) -> (i32, i32) {
    %c0_i32 = arith.constant 0 : i32
    %c0_i32_0 = arith.constant 0 : i32
    %c0_i32_1 = arith.constant 0 : i32
    return %c0_i32, %c0_i32_0 : i32, i32
  }
  func.func @transform_4(%arg0: i32) -> (i32, i32) {
    %c0_i32 = arith.constant 0 : i32
    %c0_i32_0 = arith.constant 0 : i32
    %c0_i32_1 = arith.constant 0 : i32
    return %c0_i32, %c0_i32_0 : i32, i32
  }
  func.func @transform_5(%arg0: i32) -> (i32, i32) {
    %c0_i32 = arith.constant 0 : i32
    %c0_i32_0 = arith.constant 0 : i32
    %c0_i32_1 = arith.constant 0 : i32
    return %c0_i32, %c0_i32_0 : i32, i32
  }
  func.func @transform_6(%arg0: i32) -> (i32, i32) {
    %c0_i32 = arith.constant 0 : i32
    %c0_i32_0 = arith.constant 0 : i32
    return %arg0, %c0_i32 : i32, i32
  }
}

</mosaic_0001>

<bundles_post_ra>
// kernel: custom-call.25
= control target key start
LH: loop header
LB: loop body
LE: loop exit
PB: predicated region body
PF: predicated region fallthrough
CT: control target
= control target key end

     0   :  { %s6_s0 = inlined_call_operand.vmem [shape: bf16[8,2,16], index: 0, kind: output, shape index: {}]  }

// kernel: custom-call.10
= control target key start
LH: loop header
LB: loop body
LE: loop exit
PB: predicated region body
PF: predicated region fallthrough
CT: control target
= control target key end

     0   :  { %s6_s0 = inlined_call_operand.vmem [shape: f32[2,16], index: 0, kind: output, shape index: {}]  }

// kernel: custom-call.8
= control target key start
LH: loop header
LB: loop body
LE: loop exit
PB: predicated region body
PF: predicated region fallthrough
CT: control target
= control target key end

     0   :  { %s6_s0 = inlined_call_operand.vmem [shape: bf16[2,16], index: 0, kind: output, shape index: {}]  }

// kernel: custom-call.24
= control target key start
LH: loop header
LB: loop body
LE: loop exit
PB: predicated region body
PF: predicated region fallthrough
CT: control target
= control target key end

     0   :  { %s6_s0 = inlined_call_operand.vmem [shape: bf16[8,2,16], index: 0, kind: output, shape index: {}]  }

// kernel: custom-call.12
= control target key start
LH: loop header
LB: loop body
LE: loop exit
PB: predicated region body
PF: predicated region fallthrough
CT: control target
= control target key end

     0   :  { %s6_s0 = inlined_call_operand.vmem [shape: bf16[5,32], index: 0, kind: output, shape index: {}]  }

// kernel: custom-call.13
= control target key start
LH: loop header
LB: loop body
LE: loop exit
PB: predicated region body
PF: predicated region fallthrough
CT: control target
= control target key end

     0   :  { %s6_s0 = inlined_call_operand.vmem [shape: f32[5,32], index: 0, kind: output, shape index: {}]  }

// kernel: forward.2
= control target key start
LH: loop header
LB: loop body
LE: loop exit
PB: predicated region body
PF: predicated region fallthrough
CT: control target
= control target key end

     0   :  { %v143_v0 = vmov 0.0   ;;  %vm144_vm0 = vmmov 0   ;;  %vm61_vm1 = vcmask 523264   ;;  %s189_s1 = inlined_call_operand.vmem [shape: bf16[64,128], index: 1, kind: input, shape index: {}]   ;;  %s190_s0 = inlined_call_operand.vmem [shape: bf16[16,64], index: 0, kind: input, shape index: {}]   ;;  %s191_s2 = inlined_call_operand.vmem [shape: f32[1,128], index: 2, kind: input, shape index: {}]   ;;  %s192_s3 = inlined_call_operand.vmem [shape: f32[16,128], index: 3, kind: output, shape index: {}]  }
   0x1   :  { %124 = vmatprep.subr.bf16.mxu0 %v143_v0  ;;  %v138_v1 = vld [vmem:[%s189_s1] sm:$0xff]   ;;  %132 = vmatprep.mubr.msk.bf16.mxu0 %vm144_vm0, %v143_v0  ;;  %v139_v2 = vld [vmem:[%s189_s1 + $0x8] sm:$0xff]   ;;  %v140_v3 = vld [vmem:[%s189_s1 + $0x10] sm:$0xff]  }
   0x2   :  { %125 = vmatpush3.bf16.msra.mxu0 %v138_v1  ;;  %v141_v4 = vld [vmem:[%s189_s1 + $0x18] sm:$0xff]   ;;  %v142_v5 = vld [vmem:[%s190_s0] sm:$0xff]  }
   0x3   :  { %126 = vmatprep.subr.bf16.mxu0 %v143_v0  ;;  %v112_v6 = vld [vmem:[%s191_s2] ss:$0 sm:$0xff] }
   0x6   :  { %127 = vmatpush3.bf16.msra.mxu0 %v139_v2 }
   0x7   :  { %128 = vmatprep.subr.bf16.mxu0 %v143_v0 }
   0xa   :  { %129 = vmatpush3.bf16.msra.mxu0 %v140_v3 }
   0xb   :  { %130 = vmatprep.subr.bf16.mxu0 %v143_v0 }
   0xe   :  { %131 = vmatpush3.bf16.msra.mxu0 %v141_v4 }
  0x11   :  { %133 = vmatmul.mubr.msk.bf16.vlgmr.msra.gmra.mrb[0].mxu0 %vm61_vm1, %v142_v5 }
  0xe4   :  { %v99_v7 = vpop.f32.mrb[0].mxu0 }
  0xe5   :  { %v100_v8 = vadd.f32 %v112_v6, %v99_v7  ;;  %v134_v9 = vpop.f32.mrb[1].mxu0 }
  0xe6   :  { %v102_v10 = vpop.f32.mrb[2].mxu0 }
  0xe7   :  { %106 = vst [vmem:[%s192_s3] sm:$0xff] %v100_v8  ;;  %v103_v11 = vadd.f32 %v112_v6, %v102_v10  ;;  %v135_v12 = vpop.f32.mrb[3].mxu0 }
  0xe9   :  { %107 = vst [vmem:[%s192_s3 + $0x8] sm:$0xff] %v103_v11 }

// kernel: forward.3
= control target key start
LH: loop header
LB: loop body
LE: loop exit
PB: predicated region body
PF: predicated region fallthrough
CT: control target
= control target key end

     0   :  { %v442_v0 = vmov 0.0   ;;  %vm443_vm0 = vmmov 0   ;;  %vm66_vm1 = vcmask 523264   ;;  %v444_v16 = vmov 0   ;;  %s582_s3 = inlined_call_operand.vmem [shape: bf16[64,128], index: 3, kind: input, shape index: {}]   ;;  %s583_s0 = inlined_call_operand.vmem [shape: bf16[16,64], index: 0, kind: input, shape index: {}]   ;;  %s584_s5 = inlined_call_operand.vmem [shape: f32[8,128], index: 5, kind: input, shape index: {}]   ;;  %s585_s4 = inlined_call_operand.vmem [shape: f32[128,128], index: 4, kind: input, shape index: {}]   ;;  %s586_s1 = inlined_call_operand.vmem [shape: f32[2,8,1], index: 1, kind: input, shape index: {}]   ;;  %s587_s2 = inlined_call_operand.vmem [shape: f32[16,128], index: 2, kind: input, shape index: {}]   ;;  %s588_s6 = inlined_call_operand.vmem [shape: f32[16,128], index: 6, kind: output, shape index: {}]  }
   0x1   :  { %345 = vmatprep.subr.bf16.mxu0 %v442_v0  ;;  %v429_v1 = vld [vmem:[%s582_s3] sm:$0xff]   ;;  %353 = vmatprep.mubr.msk.bf16.mxu0 %vm443_vm0, %v442_v0  ;;  %v430_v2 = vld [vmem:[%s582_s3 + $0x8] sm:$0xff]   ;;  %v431_v3 = vld [vmem:[%s582_s3 + $0x10] sm:$0xff]   ;;  %vm139_vm4 = vcmask 7168  }
   0x2   :  { %346 = vmatpush3.bf16.msra.mxu0 %v429_v1  ;;  %v432_v4 = vld [vmem:[%s582_s3 + $0x18] sm:$0xff]   ;;  %v433_v5 = vld [vmem:[%s583_s0] sm:$0xff]   ;;  %427 = vset.pattern.permute.xlu1 %v444_v16  ;;  %v213_v18 = vld [vmem:[%s585_s4 + $0x8] sm:$0xff] }
   0x3   :  { %347 = vmatprep.subr.bf16.mxu0 %v442_v0  ;;  %v319_v6 = vld [vmem:[%s584_s5] ss:$0 sm:$0xff]  ;;  %v320_v8 = vld [vmem:[%s584_s5 + $0x1] ss:$0 sm:$0xff]  ;;  %428 = vset.pattern.permute.xlu0 %v444_v16  ;;  %v214_v19 = vld [vmem:[%s585_s4 + $0x10] sm:$0xff] }
   0x4   :  { %v212_v17 = vld [vmem:[%s585_s4] sm:$0xff]  ;;  %v215_v21 = vld [vmem:[%s585_s4 + $0x18] sm:$0xff]  ;;  %v217_v24 = vld [vmem:[%s585_s4 + $0x28] sm:$0xff] }
   0x5   :  { %v392_v20 = vpack.c.bf16 %v213_v18, %v212_v17  ;;  %v396_v22 = vpack.c.bf16 %v215_v21, %v214_v19  ;;  %v216_v23 = vld [vmem:[%s585_s4 + $0x20] sm:$0xff]  ;;  %v134_v29 = vld [vmem:[%s586_s1 + $0x8] sm:$0xff] }
   0x6   :  { %348 = vmatpush3.bf16.msra.mxu0 %v430_v2  ;;  %v400_v25 = vpack.c.bf16 %v217_v24, %v216_v23  ;;  %v133_v26 = vld [vmem:[%s586_s1] sm:$0xff]  ;;  %vm136_vm5 = vcmp.gt.f32.partialorder %v134_v29, 0.5  ;;  %v223_v23 = vld [vmem:[%s585_s4 + $0x58] sm:$0xff] }
   0x7   :  { %349 = vmatprep.subr.bf16.mxu0 %v442_v0  ;;  %393 = vmatprep.subr.bf16.mxu1 %v392_v20  ;;  %vm135_vm2 = vcmp.gt.f32.partialorder %v133_v26, 0.5  ;;  %v220_v19 = vld [vmem:[%s585_s4 + $0x40] sm:$0xff] }
   0x8   :  { %395 = vmatpush3.bf16.msra.mxu1 %v392_v20  ;;  %v221_v20 = vld [vmem:[%s585_s4 + $0x48] sm:$0xff] }
   0x9   :  { %397 = vmatprep.subr.bf16.mxu1 %v396_v22  ;;  %v408_v21 = vpack.c.bf16 %v221_v20, %v220_v19 }
   0xa   :  { %350 = vmatpush3.bf16.msra.mxu0 %v431_v3 }
   0xb   :  { %351 = vmatprep.subr.bf16.mxu0 %v442_v0 }
   0xc   :  { %399 = vmatpush3.bf16.msra.mxu1 %v396_v22  ;;  %v222_v22 = vld [vmem:[%s585_s4 + $0x50] sm:$0xff] }
   0xd   :  { %401 = vmatprep.subr.bf16.mxu1 %v400_v25  ;;  %v412_v24 = vpack.c.bf16 %v223_v23, %v222_v22 }
   0xe   :  { %352 = vmatpush3.bf16.msra.mxu0 %v432_v4 }
  0x10   :  { %403 = vmatpush3.bf16.msra.mxu1 %v400_v25  ;;  %v224_v25 = vld [vmem:[%s585_s4 + $0x60] sm:$0xff] }
  0x11   :  { %354 = vmatmul.mubr.msk.bf16.vlgmr.msra.gmra.mrb[0].mxu0 %vm66_vm1, %v433_v5 }
  0xe4   :  { %v104_v7 = vpop.f32.mrb[0].mxu0 }
  0xe5   :  { %v501_v9 = vadd.f32 %v319_v6, %v104_v7  ;;  %v355_v10 = vpop.f32.mrb[1].mxu0 }
  0xe6   :  { %v107_v11 = vpop.f32.mrb[2].mxu0 }
  0xe7   :  { %v503_v12 = vadd.f32 %v319_v6, %v107_v11  ;;  %v356_v13 = vpop.f32.mrb[3].mxu0  ;;  %v121_v14 = vmul.f32 %v320_v8, %v501_v9 }
  0xe9   :  { %123 = vadd.xlane.f32.xlu0 %v121_v14  ;;  %v122_v15 = vmul.f32 %v320_v8, %v503_v12  ;;  %v218_v14 = vld [vmem:[%s585_s4 + $0x30] sm:$0xff] }
  0xed   :  { %125 = vadd.xlane.f32.xlu0 %v122_v15  ;;  %v219_v15 = vld [vmem:[%s585_s4 + $0x38] sm:$0xff] }
  0xee   :  { %v404_v16 = vpack.c.bf16 %v219_v15, %v218_v14 }
  0xf0   :  { %405 = vmatprep.subr.bf16.mxu1 %v404_v16 }
  0xf1   :  { %407 = vmatpush3.bf16.msra.mxu1 %v404_v16 }
  0xf2   :  { %409 = vmatprep.subr.bf16.mxu1 %v408_v21 }
  0xf5   :  { %411 = vmatpush3.bf16.msra.mxu1 %v408_v21 }
  0xf6   :  { %413 = vmatprep.subr.bf16.mxu1 %v412_v24 }
  0xf9   :  { %415 = vmatpush3.bf16.msra.mxu1 %v412_v24 }
 0x176   :  { %v124_v27 = vpop.xlane.xlu0 %123 }
 0x177   :  { %vm127_vm3 = vcmp.ge.f32.partialorder %v124_v27, 0.0  ;;  %v129_v28 = vmul.f32 0.01, %v124_v27 }
 0x179   :  { %v131_v30 = vsel %vm127_vm3, %v124_v27, %v129_v28  ;;  %v226_v28 = vld [vmem:[%s585_s4 + $0x70] sm:$0xff] }
 0x17a   :  { %v137_v31 = vsel %vm135_vm2, %v131_v30, -1e+30  ;;  %v126_v32 = vpop.xlane.xlu0 %125 }
 0x17b   :  { %v140_v33 = vsel %vm139_vm4, %v137_v31, -inf  ;;  %vm128_vm6 = vcmp.ge.f32.partialorder %v126_v32, 0.0  ;;  %v130_v34 = vmul.f32 0.01, %v126_v32 }
 0x17c   :  { %v141_v35 = vrot.slane %v140_v33, 4 }
 0x17d   :  { %v132_v36 = vsel %vm128_vm6, %v126_v32, %v130_v34 }
 0x17e   :  { %v142_v37 = vmax.f32 %v140_v33, %v141_v35  ;;  %v138_v38 = vsel %vm136_vm5, %v132_v36, -1e+30 }
 0x17f   :  { %v147_v39 = vsel %vm139_vm4, %v138_v38, -inf }
 0x180   :  { %v143_v40 = vrot.slane %v142_v37, 2  ;;  %v148_v41 = vrot.slane %v147_v39, 4 }
 0x182   :  { %v144_v42 = vmax.f32 %v142_v37, %v143_v40  ;;  %v149_v43 = vmax.f32 %v147_v39, %v148_v41 }
 0x184   :  { %v145_v44 = vrot.slane %v144_v42, 1  ;;  %v150_v45 = vrot.slane %v149_v43, 2 }
 0x186   :  { %v146_v46 = vmax.f32 %v144_v42, %v145_v44  ;;  %v151_v47 = vmax.f32 %v149_v43, %v150_v45  ;;  %v206_v43 = vld [vmem:[%s587_s2] sm:$0xff] }
 0x188   :  { %v154_v48 = vsub.f32 %v137_v31, %v146_v46  ;;  %v152_v49 = vrot.slane %v151_v47, 1 }
 0x18a   :  { %v156_v50 = vmul.f32 1.442695, %v154_v48  ;;  %v153_v51 = vmax.f32 %v151_v47, %v152_v49 }
 0x18c   :  { %434 = vpow2.f32 %v156_v50  ;;  %v155_v52 = vsub.f32 %v138_v38, %v153_v51  ;;  %v321_v51 = vld [vmem:[%s584_s5 + $0x2] ss:$0 sm:$0xff] }
 0x18e   :  { %v158_v53 = vmul.f32 1.442695, %v155_v52 }
 0x190   :  { %436 = vpow2.f32 %v158_v53 }
 0x196   :  { %v435_v54 = vpop.eup %434 }
 0x197   :  { %v160_v55 = vmul.f32 %v435_v54, %v133_v26  ;;  %v225_v26 = vld [vmem:[%s585_s4 + $0x68] sm:$0xff] }
 0x198   :  { %v416_v27 = vpack.c.bf16 %v225_v26, %v224_v25 }
 0x199   :  { %v162_v56 = vsel %vm139_vm4, %v160_v55, 0.0 }
 0x19a   :  { %v437_v57 = vpop.eup %436  ;;  %v163_v58 = vrot.slane %v162_v56, 4  ;;  %417 = vmatprep.subr.bf16.mxu1 %v416_v27 }
 0x19b   :  { %v161_v59 = vmul.f32 %v437_v57, %v134_v29  ;;  %v227_v29 = vld [vmem:[%s585_s4 + $0x78] sm:$0xff]  ;;  %419 = vmatpush3.bf16.msra.mxu1 %v416_v27 }
 0x19c   :  { %v164_v60 = vadd.f32 %v163_v58, %v162_v56  ;;  %v420_v30 = vpack.c.bf16 %v227_v29, %v226_v28 }
 0x19d   :  { %v169_v61 = vsel %vm139_vm4, %v161_v59, 0.0 }
 0x19e   :  { %v170_v62 = vrot.slane %v169_v61, 4  ;;  %v165_v63 = vrot.slane %v164_v60, 2  ;;  %421 = vmatprep.subr.bf16.mxu1 %v420_v30 }
 0x19f   :  { %423 = vmatpush3.bf16.msra.mxu1 %v420_v30 }
 0x1a0   :  { %v171_v0 = vadd.f32 %v170_v62, %v169_v61  ;;  %v166_v1 = vadd.f32 %v165_v63, %v164_v60 }
 0x1a2   :  { %v172_v2 = vrot.slane %v171_v0, 2  ;;  %v167_v3 = vrot.slane %v166_v1, 1 }
 0x1a4   :  { %v173_v4 = vadd.f32 %v172_v2, %v171_v0  ;;  %v168_v5 = vadd.f32 %v167_v3, %v166_v1 }
 0x1a6   :  { %v174_v6 = vrot.slane %v173_v4, 1  ;;  %v176_v7 = vmax.f32 %v168_v5, 1e-20 }
 0x1a8   :  { %v175_v8 = vadd.f32 %v174_v6, %v173_v4  ;;  %438 = vrcp.f32 %v176_v7 }
 0x1aa   :  { %v177_v10 = vmax.f32 %v175_v8, 1e-20 }
 0x1ac   :  { %440 = vrcp.f32 %v177_v10 }
 0x1b2   :  { %v439_v11 = vpop.eup %438 }
 0x1b3   :  { %v180_v13 = vmul.f32 %v439_v11, %v160_v55 }
 0x1b5   :  { %184 = vperm.xlu1 %427, %v180_v13  }
 0x1b6   :  { %v441_v17 = vpop.eup %440 }
 0x1b7   :  { %v181_v18 = vmul.f32 %v441_v17, %v161_v59 }
 0x1b9   :  { %189 = vperm.xlu1 %427, %v181_v18  }
 0x234   :  { %v185_v31 = vpop.permute.xlu1 %184 }
 0x235   :  { %v192_v32 = vmul.f32 %v185_v31, %v501_v9  ;;  %v207_v9 = vld [vmem:[%s587_s2 + $0x8] sm:$0xff] }
 0x237   :  { %v194_v33 = vrot.slane %v192_v32, 4 }
 0x238   :  { %v190_v34 = vpop.permute.xlu1 %189 }
 0x239   :  { %v195_v35 = vadd.f32 %v194_v33, %v192_v32  ;;  %v193_v36 = vmul.f32 %v190_v34, %v503_v12 }
 0x23b   :  { %v196_v37 = vrot.slane %v195_v35, 2  ;;  %v200_v38 = vrot.slane %v193_v36, 4 }
 0x23d   :  { %v201_v39 = vadd.f32 %v200_v38, %v193_v36  ;;  %v197_v40 = vadd.f32 %v196_v37, %v195_v35 }
 0x23f   :  { %v202_v41 = vrot.slane %v201_v39, 2  ;;  %v198_v42 = vrot.slane %v197_v40, 1 }
 0x241   :  { %v203_v44 = vadd.f32 %v202_v41, %v201_v39  ;;  %v199_v45 = vadd.f32 %v198_v42, %v197_v40 }
 0x243   :  { %v204_v46 = vrot.slane %v203_v44, 1  ;;  %v208_v47 = vadd.f32 %v206_v43, %v199_v45 }
 0x245   :  { %v210_v48 = vmax.f32 %v208_v47, 0.0  ;;  %v205_v12 = vadd.f32 %v204_v46, %v203_v44 }
 0x247   :  { %389 = vmatprep.mubr.f32.mxu1 %v210_v48  ;;  %v209_v49 = vadd.f32 %v207_v9, %v205_v12 }
 0x249   :  { %v211_v50 = vmax.f32 %v209_v49, 0.0 }
 0x24b   :  { %390 = vmatmul.mubr.f32.vlgmr.msra.gmra.mrb[0].mxu1 %v211_v50 }
 0x31e   :  { %v391_v52 = vpop.f32.mrb[0].mxu1 }
 0x31f   :  { %v304_v53 = vadd.f32 %v391_v52, %v321_v51  ;;  %v298_v54 = vpop.f32.mrb[1].mxu1 }
 0x320   :  { %v299_v55 = vadd.f32 %v321_v51, %v298_v54 }
 0x321   :  { %308 = vst [vmem:[%s588_s6 + $0x8] sm:$0xff] %v304_v53 }
 0x322   :  { %307 = vst [vmem:[%s588_s6] sm:$0xff] %v299_v55 }

</bundles_post_ra>
